<compile_context>
chip_gen: v6e
topology: v6e:2x2x1
jax: 0.10.0
libtpu: 0.0.40
codegen_flags: <defaults>
</compile_context>

<pallas_src>
import functools

import jax
import jax.numpy as jnp
from jax.experimental import pallas as pl
from jax.experimental.pallas import tpu as pltpu

LANE = 128          # lane width; hidden-2 / action logits padded to this
H1 = 128            # first hidden layer (already lane-dense)
NEG_BIG = -1e30     # bias for padded action-logit lanes -> exp() == 0


def _round_up(n, m):
    return ((n + m - 1) // m) * m


def actor_mlp_kernel(x_ref, w1_ref, b1_ref, w2_ref, b2_ref, w3_ref, b3_ref,
                     out_ref):
    """Fused 3-layer MLP + softmax on one (TILE_B, ...) batch tile."""
    a_dim = out_ref.shape[-1]
    # x is read from HBM as f32; the bf16 cast is VPU filler hidden under DMA.
    x = x_ref[...].astype(jnp.bfloat16)                 # (TILE_B, F)

    # Layer 1: Linear(F, 128) + ReLU   (bf16 MXU matmul, f32 accumulate)
    h1 = jnp.dot(x, w1_ref[...], preferred_element_type=jnp.float32)
    h1 = jnp.maximum(h1 + b1_ref[...], 0.0)

    # Layer 2: Linear(128, 128-padded-from-64) + ReLU  (zero padding is exact)
    h2 = jnp.dot(h1.astype(jnp.bfloat16), w2_ref[...],
                 preferred_element_type=jnp.float32)
    h2 = jnp.maximum(h2 + b2_ref[...], 0.0)

    # Layer 3: Linear(128, 128-padded-from-A)
    logits = jnp.dot(h2.astype(jnp.bfloat16), w3_ref[...],
                     preferred_element_type=jnp.float32)
    logits = logits + b3_ref[...]                       # padded lanes -> -1e30

    # Numerically stable softmax over lane-dense 128 logits; padded lanes
    # exp() to exactly 0.  Exact division so each row sums to 1.
    m = jnp.max(logits, axis=-1, keepdims=True)
    e = jnp.exp(logits - m)
    denom = jnp.sum(e, axis=-1, keepdims=True)
    probs = e / denom
    # Slim store: only the real action lanes hit HBM (masked vst, negligible).
    out_ref[...] = probs[:, :a_dim].astype(out_ref.dtype)


def init_params(key, feature_dim, action_dim):
    """nn.Linear-style uniform(-1/sqrt(fan_in), 1/sqrt(fan_in)) init (f32)."""
    dims = [(feature_dim, H1), (H1, 64), (64, action_dim)]
    params = []
    for fan_in, fan_out in dims:
        kw, kb, key = jax.random.split(key, 3)
        bound = 1.0 / jnp.sqrt(fan_in)
        w = jax.random.uniform(kw, (fan_in, fan_out), jnp.float32, -bound, bound)
        b = jax.random.uniform(kb, (1, fan_out), jnp.float32, -bound, bound)
        params.extend([w, b])
    return tuple(params)


def prepare_params(params, action_dim):
    """Pad hidden-2 (64->128) and action (A->128) lanes; cast weights to bf16.

    Zero-padding of w2 columns / b2 / w3 rows is exact (padded h2 lanes are 0
    after ReLU and contribute nothing).  Padded action lanes get a -1e30 bias
    so they vanish under softmax.
    """
    w1, b1, w2, b2, w3, b3 = params
    h2 = w2.shape[1]

    w2p = jnp.pad(w2, ((0, 0), (0, LANE - h2)))
    b2p = jnp.pad(b2, ((0, 0), (0, LANE - h2)))
    w3p = jnp.pad(w3, ((0, LANE - h2), (0, LANE - action_dim)))
    b3p = jnp.pad(b3, ((0, 0), (0, LANE - action_dim)),
                  constant_values=NEG_BIG)

    return (w1.astype(jnp.bfloat16), b1.astype(jnp.float32),
            w2p.astype(jnp.bfloat16), b2p.astype(jnp.float32),
            w3p.astype(jnp.bfloat16), b3p.astype(jnp.float32))


@functools.partial(jax.jit, static_argnames=("action_dim", "tile_b"))
def discrete_actor_forward(x, prepared, *, action_dim, tile_b=2048):
    """x: (B, feature_dim) f32 -> (B, action_dim) f32 softmax probabilities."""
    w1, b1, w2, b2, w3, b3 = prepared
    B, F = x.shape

    # --- batch tiling --------------------------------------------------------
    #  * tile rows are multiples of 16 (bf16 sublane packing; v5e friendly)
    #  * when >1 tile is needed, keep the tile count even so the "parallel"
    #    grid axis gives both v7x TensorCores work.
    max_tile = max(16, _round_up(min(tile_b, B), 16))
    num_tiles = pl.cdiv(B, max_tile)
    if num_tiles > 1:
        num_tiles = _round_up(num_tiles, 2)
    tile_b = max(16, _round_up(pl.cdiv(B, num_tiles), 16))
    b_pad = num_tiles * tile_b
    if b_pad != B:                       # pad only when B is not tile-aligned
        x = jnp.pad(x, ((0, b_pad - B), (0, 0)))

    resident = lambda shape: pl.BlockSpec(shape, lambda i: (0, 0))

    weight_bytes = sum(int(a.size) * a.dtype.itemsize for a in prepared)
    cost = pl.CostEstimate(
        flops=2 * b_pad * (F * H1 + H1 * LANE + LANE * LANE),
        transcendentals=b_pad * LANE,
        bytes_accessed=b_pad * F * 4 + weight_bytes + b_pad * action_dim * 4,
    )

    # Right-sized VMEM budget: f32 activation temporaries + double-buffered
    # x/out tiles + resident weights + headroom; clamp to [16, 60] MiB.
    act_bytes = 6 * tile_b * LANE * 4
    io_bytes = 2 * tile_b * (F + action_dim) * 4
    vmem_limit = int(min(60 << 20,
                         max(16 << 20,
                             act_bytes + io_bytes + 4 * weight_bytes + (4 << 20))))

    out = pl.pallas_call(
        actor_mlp_kernel,
        out_shape=jax.ShapeDtypeStruct((b_pad, action_dim), jnp.float32),
        grid=(num_tiles,),
        in_specs=[
            pl.BlockSpec((tile_b, F), lambda i: (i, 0)),   # streamed f32 batch tile
            resident(w1.shape), resident(b1.shape),        # weights stay VMEM-resident
            resident(w2.shape), resident(b2.shape),
            resident(w3.shape), resident(b3.shape),
        ],
        out_specs=pl.BlockSpec((tile_b, action_dim), lambda i: (i, 0)),
        compiler_params=pltpu.CompilerParams(
            dimension_semantics=("parallel",),   # megacore sharding on v7x
            vmem_limit_bytes=vmem_limit,
        ),
        cost_estimate=cost,
    )(x, w1, b1, w2, b2, w3, b3)

    return out if b_pad == B else out[:B]


def reference_forward(x, prepared, action_dim):
    """Pure-JAX reference using the same bf16 weights / padded params."""
    w1, b1, w2, b2, w3, b3 = prepared
    xb = x.astype(jnp.bfloat16)
    h1 = jnp.maximum(jnp.dot(xb, w1, preferred_element_type=jnp.float32) + b1, 0.0)
    h2 = jnp.maximum(jnp.dot(h1.astype(jnp.bfloat16), w2,
                             preferred_element_type=jnp.float32) + b2, 0.0)
    logits = jnp.dot(h2.astype(jnp.bfloat16), w3,
                     preferred_element_type=jnp.float32) + b3
    return jax.nn.softmax(logits, axis=-1)[:, :action_dim]


if __name__ == "__main__":
    feature_dim = 8     # small state-feature vector
    action_dim = 4      # discrete action count
    batch = 24          # deliberately not a multiple of the tile

    key = jax.random.PRNGKey(0)
    kx, kp = jax.random.split(key)
    x = jax.random.normal(kx, (batch, feature_dim), jnp.float32)

    params = init_params(kp, feature_dim, action_dim)
    prepared = prepare_params(params, action_dim)

    # tile_b=16 -> grid of 2 batch tiles (exercises pipelining, batch padding,
    # and the even-tile-count path).
    out = discrete_actor_forward(x, prepared, action_dim=action_dim, tile_b=16)
    out = jax.block_until_ready(out)

    ref = reference_forward(x, prepared, action_dim)

    assert out.shape == (batch, action_dim)
    assert jnp.allclose(jnp.sum(out, axis=-1), 1.0, atol=1e-4)   # exact softmax division
    assert jnp.allclose(out, ref, atol=2e-3, rtol=2e-3)

    print("KERNEL_OK")
</pallas_src>

<mosaic_0001>
module attributes {stable_mosaic.version = 11 : i64} {
  func.func @actor_mlp_kernel(%arg0: i32, %arg1: memref<16x8xf32, #tpu.memory_space<vmem>>, %arg2: memref<8x128xbf16, #tpu.memory_space<vmem>>, %arg3: memref<1x128xf32, #tpu.memory_space<vmem>>, %arg4: memref<128x128xbf16, #tpu.memory_space<vmem>>, %arg5: memref<1x128xf32, #tpu.memory_space<vmem>>, %arg6: memref<128x128xbf16, #tpu.memory_space<vmem>>, %arg7: memref<1x128xf32, #tpu.memory_space<vmem>>, %arg8: memref<16x4xf32, #tpu.memory_space<vmem>>) attributes {dimension_semantics = [#tpu.dimension_semantics<parallel>], iteration_bounds = array<i64: 2>, scalar_prefetch = 0 : i64, scratch_operands = 0 : i64, tpu.core_type = #tpu.core_type<tc>, window_params = [{transform_indices = @transform_0, window_bounds = array<i64: 16, 8>}, {pipeline_mode = #tpu.pipeline_mode<synchronous>, transform_indices = @transform_1, window_bounds = array<i64: 8, 128>}, {pipeline_mode = #tpu.pipeline_mode<synchronous>, transform_indices = @transform_2, window_bounds = array<i64: 1, 128>}, {pipeline_mode = #tpu.pipeline_mode<synchronous>, transform_indices = @transform_3, window_bounds = array<i64: 128, 128>}, {pipeline_mode = #tpu.pipeline_mode<synchronous>, transform_indices = @transform_4, window_bounds = array<i64: 1, 128>}, {pipeline_mode = #tpu.pipeline_mode<synchronous>, transform_indices = @transform_5, window_bounds = array<i64: 128, 128>}, {pipeline_mode = #tpu.pipeline_mode<synchronous>, transform_indices = @transform_6, window_bounds = array<i64: 1, 128>}, {transform_indices = @transform_7, window_bounds = array<i64: 16, 4>}]} {
    %c0 = arith.constant 0 : index
    %c0_0 = arith.constant 0 : index
    %0 = vector.load %arg1[%c0, %c0_0] : memref<16x8xf32, #tpu.memory_space<vmem>>, vector<16x8xf32>
    %1 = arith.truncf %0 : vector<16x8xf32> to vector<16x8xbf16>
    %c0_1 = arith.constant 0 : index
    %c0_2 = arith.constant 0 : index
    %2 = vector.load %arg2[%c0_1, %c0_2] : memref<8x128xbf16, #tpu.memory_space<vmem>>, vector<8x128xbf16>
    %cst = arith.constant dense<0.000000e+00> : vector<16x128xf32>
    %3 = tpu.matmul %1, %2, %cst {dimension_numbers = #tpu.dot_dimension_numbers<[1], [0], [0], [1], [0, 0, 1, 1], [], []>} : vector<16x8xbf16>, vector<8x128xbf16>, vector<16x128xf32> -> vector<16x128xf32>
    %c0_3 = arith.constant 0 : index
    %c0_4 = arith.constant 0 : index
    %4 = vector.load %arg3[%c0_3, %c0_4] : memref<1x128xf32, #tpu.memory_space<vmem>>, vector<1x128xf32>
    %5 = vector.broadcast %4 : vector<1x128xf32> to vector<16x128xf32>
    %6 = arith.addf %3, %5 : vector<16x128xf32>
    %cst_5 = arith.constant 0.000000e+00 : f32
    %7 = vector.broadcast %cst_5 : f32 to vector<16x128xf32>
    %8 = arith.maximumf %6, %7 : vector<16x128xf32>
    %9 = arith.truncf %8 : vector<16x128xf32> to vector<16x128xbf16>
    %c0_6 = arith.constant 0 : index
    %c0_7 = arith.constant 0 : index
    %10 = vector.load %arg4[%c0_6, %c0_7] : memref<128x128xbf16, #tpu.memory_space<vmem>>, vector<128x128xbf16>
    %cst_8 = arith.constant dense<0.000000e+00> : vector<16x128xf32>
    %11 = tpu.matmul %9, %10, %cst_8 {dimension_numbers = #tpu.dot_dimension_numbers<[1], [0], [0], [1], [0, 0, 1, 1], [], []>} : vector<16x128xbf16>, vector<128x128xbf16>, vector<16x128xf32> -> vector<16x128xf32>
    %c0_9 = arith.constant 0 : index
    %c0_10 = arith.constant 0 : index
    %12 = vector.load %arg5[%c0_9, %c0_10] : memref<1x128xf32, #tpu.memory_space<vmem>>, vector<1x128xf32>
    %13 = vector.broadcast %12 : vector<1x128xf32> to vector<16x128xf32>
    %14 = arith.addf %11, %13 : vector<16x128xf32>
    %cst_11 = arith.constant 0.000000e+00 : f32
    %15 = vector.broadcast %cst_11 : f32 to vector<16x128xf32>
    %16 = arith.maximumf %14, %15 : vector<16x128xf32>
    %17 = arith.truncf %16 : vector<16x128xf32> to vector<16x128xbf16>
    %c0_12 = arith.constant 0 : index
    %c0_13 = arith.constant 0 : index
    %18 = vector.load %arg6[%c0_12, %c0_13] : memref<128x128xbf16, #tpu.memory_space<vmem>>, vector<128x128xbf16>
    %cst_14 = arith.constant dense<0.000000e+00> : vector<16x128xf32>
    %19 = tpu.matmul %17, %18, %cst_14 {dimension_numbers = #tpu.dot_dimension_numbers<[1], [0], [0], [1], [0, 0, 1, 1], [], []>} : vector<16x128xbf16>, vector<128x128xbf16>, vector<16x128xf32> -> vector<16x128xf32>
    %c0_15 = arith.constant 0 : index
    %c0_16 = arith.constant 0 : index
    %20 = vector.load %arg7[%c0_15, %c0_16] : memref<1x128xf32, #tpu.memory_space<vmem>>, vector<1x128xf32>
    %21 = vector.broadcast %20 : vector<1x128xf32> to vector<16x128xf32>
    %22 = arith.addf %19, %21 : vector<16x128xf32>
    %cst_17 = arith.constant dense<0xFF800000> : vector<16xf32>
    %23 = vector.multi_reduction <maximumf>, %22, %cst_17 [1] : vector<16x128xf32> to vector<16xf32>
    %24 = vector.shape_cast %23 : vector<16xf32> to vector<16x1xf32>
    %25 = vector.broadcast %24 : vector<16x1xf32> to vector<16x128xf32>
    %26 = arith.subf %22, %25 : vector<16x128xf32>
    %27 = math.exp %26 : vector<16x128xf32>
    %cst_18 = arith.constant dense<0.000000e+00> : vector<16xf32>
    %28 = vector.multi_reduction <add>, %27, %cst_18 [1] : vector<16x128xf32> to vector<16xf32>
    %29 = vector.shape_cast %28 : vector<16xf32> to vector<16x1xf32>
    %30 = vector.broadcast %29 : vector<16x1xf32> to vector<16x128xf32>
    %31 = arith.divf %27, %30 : vector<16x128xf32>
    %32 = vector.extract_strided_slice %31 {offsets = [0, 0], sizes = [16, 4], strides = [1, 1]} : vector<16x128xf32> to vector<16x4xf32>
    %c0_19 = arith.constant 0 : index
    %c0_20 = arith.constant 0 : index
    %33 = vector.load %arg8[%c0_19, %c0_20] : memref<16x4xf32, #tpu.memory_space<vmem>>, vector<16x4xf32>
    tpu.vector_store %arg8[%c0_19, %c0_20], %32 {strides = array<i32>} : memref<16x4xf32, #tpu.memory_space<vmem>>, vector<16x4xf32>,
    return
  }
  func.func @transform_0(%arg0: i32) -> (i32, i32) {
    %c0_i32 = arith.constant 0 : i32
    %c0_i32_0 = arith.constant 0 : i32
    return %arg0, %c0_i32 : i32, i32
  }
  func.func @transform_1(%arg0: i32) -> (i32, i32) {
    %c0_i32 = arith.constant 0 : i32
    %c0_i32_0 = arith.constant 0 : i32
    %c0_i32_1 = arith.constant 0 : i32
    return %c0_i32, %c0_i32_0 : i32, i32
  }
  func.func @transform_2(%arg0: i32) -> (i32, i32) {
    %c0_i32 = arith.constant 0 : i32
    %c0_i32_0 = arith.constant 0 : i32
    %c0_i32_1 = arith.constant 0 : i32
    return %c0_i32, %c0_i32_0 : i32, i32
  }
  func.func @transform_3(%arg0: i32) -> (i32, i32) {
    %c0_i32 = arith.constant 0 : i32
    %c0_i32_0 = arith.constant 0 : i32
    %c0_i32_1 = arith.constant 0 : i32
    return %c0_i32, %c0_i32_0 : i32, i32
  }
  func.func @transform_4(%arg0: i32) -> (i32, i32) {
    %c0_i32 = arith.constant 0 : i32
    %c0_i32_0 = arith.constant 0 : i32
    %c0_i32_1 = arith.constant 0 : i32
    return %c0_i32, %c0_i32_0 : i32, i32
  }
  func.func @transform_5(%arg0: i32) -> (i32, i32) {
    %c0_i32 = arith.constant 0 : i32
    %c0_i32_0 = arith.constant 0 : i32
    %c0_i32_1 = arith.constant 0 : i32
    return %c0_i32, %c0_i32_0 : i32, i32
  }
  func.func @transform_6(%arg0: i32) -> (i32, i32) {
    %c0_i32 = arith.constant 0 : i32
    %c0_i32_0 = arith.constant 0 : i32
    %c0_i32_1 = arith.constant 0 : i32
    return %c0_i32, %c0_i32_0 : i32, i32
  }
  func.func @transform_7(%arg0: i32) -> (i32, i32) {
    %c0_i32 = arith.constant 0 : i32
    %c0_i32_0 = arith.constant 0 : i32
    return %arg0, %c0_i32 : i32, i32
  }
}

</mosaic_0001>

<bundles_post_ra>
// kernel: discrete_actor_forward.1
= control target key start
LH: loop header
LB: loop body
LE: loop exit
PB: predicated region body
PF: predicated region fallthrough
CT: control target
= control target key end

     0   :  { %12 = vsyncpa [#allocation3], 0  ;;  %s906_s24 = smov 0   ;;  %s1010_s0 = inlined_call_operand.vmem [shape: f32[32,8], index: 0, kind: input, shape index: {}]   ;;  %s1011_s1 = inlined_call_operand.vmem [shape: bf16[8,128], index: 1, kind: input, shape index: {}]   ;;  %s1012_s2 = inlined_call_operand.vmem [shape: f32[1,128], index: 2, kind: input, shape index: {}]   ;;  %s1013_s3 = inlined_call_operand.vmem [shape: bf16[128,128], index: 3, kind: input, shape index: {}]   ;;  %s1014_s4 = inlined_call_operand.vmem [shape: f32[1,128], index: 4, kind: input, shape index: {}]   ;;  %s1015_s5 = inlined_call_operand.hbm [shape: bf16[128,128], index: 5, kind: input, shape index: {}]   ;;  %s1016_s6 = inlined_call_operand.vmem [shape: f32[1,128], index: 6, kind: input, shape index: {}]   ;;  %s1017_s7 = inlined_call_operand.vmem [shape: f32[32,4], index: 7, kind: output, shape index: {}]  }
   0x1 LB: > { %s677_s25 = sadd.s32 4294967295, %s859_s24   ;;  %p679_p0 = scmp.ge.s32.totalorder %s859_s24, 1  ;;  %s859_s24 = sphi %s906_s24, %s18_s24  }
   0x2   : > { %p201_p1 = scmp.lt.s32.totalorder %s859_s24, 3  ;;  %s861_s26 = smov [#allocation2]  }
   0x3   : > { %s225_s27 = sshll.u32 %s861_s26, 4  ;;  %p918_p3 = scmp.eq.s32.totalorder %s677_s25, 0  ;;  %s226_s27 = int_to_ptr.vmem [resolvable:$true] %s225_s27 }
   0x4   : > { %p914_p2 = pnand %p679_p0, %p201_p1  ;;  %s834_s30 = scalar_lea.vmem %s226_s27, 1024 }
   0x5   : > { %p835_p7 = scmp.ne.s32.totalorder %s226_s27, %s834_s30  ;;  %p842_p10 = scmp.lt.s32.totalorder %s226_s27, %s226_s27 }
   0x6   : > { %p780_p4 = pneg %p914_p2  ;;  %p843_p11 = scmp.lt.s32.totalorder %s834_s30, %s834_s30 }
   0x8   : > { %p781_p5 = pnand %p918_p3, %p780_p4  ;;  %p844_p12 = por %p843_p11, %p842_p10 }
   0xa   : > { %p825_p6 = pneg %p781_p5 }
   0xc   : > { %p837_p8 = pnand %p835_p7, %p825_p6 }
   0xe   : > { %p838_p9 = pneg %p837_p8 }
  0x10   : > { %p845_p13 = pnand %p844_p12, %p838_p9 }
  0x12   : > { %848 = shalt.err (!%p845_p13)
}
  0x13   : > { %s862_s8 = smov 64   ;;  %s863_s9 = smov 4  }
  0x14   : > { %783 = dma.hbm_to_vmem [thread:$0]  (!%p781_p5), %s1015_s5, 1024, %s226_s27, [#allocation3], %s862_s8, %s862_s8, %s863_s9  }
  0x15   : > { %253 = sbr.rel (%p914_p2) target bundleno = 952 (0x3b8), region = 48 }
  0x1a   : > { %854 = dma.done.wait (%p918_p3), [#allocation3], 1024  }
  0x1b   : > { %856 = vsyncadd (%p918_p3), [#allocation3], 4294966272  ;;  %s684_s12 = sshll.u32 %s677_s25, 1  ;;  %v864_v0 = vmov 0.0   ;;  %vm865_vm0 = vmmov 0   ;;  %vm313_vm1 = vcmask 1043456  }
  0x1c   : > { %730 = vmatprep.subr.bf16.mxu0 %v864_v0  ;;  %732 = vmatprep.mubr.msk.bf16.mxu0 %vm865_vm0, %v864_v0  ;;  %p286_p0 = scmp.lt.s32.totalorder %s684_s12, 3  ;;  %v301_v1 = vld [vmem:[%s1011_s1] sm:$0xf]  ;;  %v799_v6 = vld [vmem:[%s1013_s3 + $0x38] sm:$0xff]   ;;  %vm309_vm2 = vcmask 64512   ;;  %v800_v7 = vld [vmem:[%s1013_s3 + $0x30] sm:$0xff]  }
  0x1d   : > { %736 = vmatprep.subr.bf16.mxu1 %v864_v0  ;;  %752 = vmatprep.mubr.msk.bf16.mxu1 %vm865_vm0, %v864_v0  ;;  %v315_v4 = vsel %vm313_vm1, %v301_v1, 0  ;;  %v801_v8 = vld [vmem:[%s1013_s3 + $0x28] sm:$0xff]   ;;  %v802_v9 = vld [vmem:[%s1013_s3 + $0x20] sm:$0xff]   ;;  %v803_v10 = vld [vmem:[%s1013_s3 + $0x18] sm:$0xff]   ;;  %vm606_vm3 = vcmask 31744  }
  0x1e   : > { %s1021_s12 = smov (!%p286_p0, %s684_s12), 3  ;;  %731 = vmatpush3.bf16.msra.mxu0 %v315_v4  ;;  %737 = vmatpush3.bf16.msra.mxu1 %v799_v6  ;;  %v804_v11 = vld [vmem:[%s1013_s3 + $0x10] sm:$0xff]   ;;  %v805_v12 = vld [vmem:[%s1013_s3 + $0x8] sm:$0xff]   ;;  %v806_v13 = vld [vmem:[%s1013_s3] sm:$0xff]  }
  0x1f   : > { %s685_s13 = sshll.u32 %s1021_s12, 3  ;;  %756 = vmatprep.subr.bf16.mxu0 %v864_v0  ;;  %738 = vmatprep.subr.bf16.mxu1 %v864_v0  ;;  %v807_v14 = vld [vmem:[#allocation2 + $0x38] sm:$0xff]   ;;  %v808_v15 = vld [vmem:[#allocation2 + $0x30] sm:$0xff]   ;;  %v809_v16 = vld [vmem:[#allocation2 + $0x28] sm:$0xff]  }
  0x20   : > { %s289_s16 = scalar_lea.vmem %s1010_s0, %s685_s13  ;;  %v810_v17 = vld [vmem:[#allocation2 + $0x20] sm:$0xff]   ;;  %v811_v18 = vld [vmem:[#allocation2 + $0x18] sm:$0xff]   ;;  %v812_v29 = vld [vmem:[#allocation2 + $0x10] sm:$0xff]   ;;  %s295_s23 = scalar_lea.vmem %s1017_s7, %s685_s13 }
  0x21   : > { %v298_v2 = vld [vmem:[%s289_s16] sm:$0xff]  ;;  %v299_v3 = vld [vmem:[%s289_s16 + $0x8] sm:$0xff] }
  0x22   : > { %v300_v5 = vpack.c.bf16 %v299_v3, %v298_v2  ;;  %739 = vmatpush3.bf16.msra.mxu1 %v800_v7  ;;  %v688_v19 = vld [vmem:[%s1012_s2] ss:$0 sm:$0xff]  ;;  %v813_v30 = vld [vmem:[#allocation2 + $0x8] sm:$0xff]  }
  0x23   : > { %740 = vmatprep.subr.bf16.mxu1 %v864_v0  ;;  %v814_v31 = vld [vmem:[#allocation2] sm:$0xff]  }
  0x24   : > { %733 = vmatmul.mubr.msk.bf16.vlgmr.msra.gmra.mxu0 %vm309_vm2, %v300_v5  ;;  %v690_v32 = vld [vmem:[%s1014_s4] ss:$0 sm:$0xff] }
  0x25   : > { %772 = vmatprep.mubr.msk.bf16.mxu0 %vm865_vm0, %v864_v0  ;;  %757 = vmatpush3.bf16.msra.mxu0 %v807_v14  ;;  %v699_v42 = vld [vmem:[%s1016_s6] ss:$0 sm:$0xff] }
  0x26   : > { %741 = vmatpush3.bf16.msra.mxu1 %v801_v8  ;;  %758 = vmatprep.subr.bf16.mxu0 %v864_v0 }
  0x27   : > { %742 = vmatprep.subr.bf16.mxu1 %v864_v0 }
  0x29   : > { %759 = vmatpush3.bf16.msra.mxu0 %v808_v15 }
  0x2a   : > { %743 = vmatpush3.bf16.msra.mxu1 %v802_v9  ;;  %760 = vmatprep.subr.bf16.mxu0 %v864_v0 }
  0x2b   : > { %744 = vmatprep.subr.bf16.mxu1 %v864_v0 }
  0x2d   : > { %761 = vmatpush3.bf16.msra.mxu0 %v809_v16 }
  0x2e   : > { %745 = vmatpush3.bf16.msra.mxu1 %v803_v10  ;;  %762 = vmatprep.subr.bf16.mxu0 %v864_v0 }
  0x2f   : > { %746 = vmatprep.subr.bf16.mxu1 %v864_v0 }
  0x31   : > { %763 = vmatpush3.bf16.msra.mxu0 %v810_v17 }
  0x32   : > { %747 = vmatpush3.bf16.msra.mxu1 %v804_v11  ;;  %764 = vmatprep.subr.bf16.mxu0 %v864_v0 }
  0x33   : > { %748 = vmatprep.subr.bf16.mxu1 %v864_v0 }
  0x35   : > { %765 = vmatpush3.bf16.msra.mxu0 %v811_v18 }
  0x36   : > { %749 = vmatpush3.bf16.msra.mxu1 %v805_v12  ;;  %766 = vmatprep.subr.bf16.mxu0 %v864_v0 }
  0x37   : > { %750 = vmatprep.subr.bf16.mxu1 %v864_v0 }
  0x39   : > { %767 = vmatpush3.bf16.msra.mxu0 %v812_v29 }
  0x3a   : > { %751 = vmatpush3.bf16.msra.mxu1 %v806_v13  ;;  %768 = vmatprep.subr.bf16.mxu0 %v864_v0 }
  0x3d   : > { %769 = vmatpush3.bf16.msra.mxu0 %v813_v30 }
  0x3e   : > { %770 = vmatprep.subr.bf16.mxu0 %v864_v0 }
  0x41   : > { %771 = vmatpush3.bf16.msra.mxu0 %v814_v31 }
  0xe4   : > { %v351_v20 = vpop.f32.mrf.mxu0 }
  0xe5   : > { %v352_v22 = vadd.f32 %v688_v19, %v351_v20 }
  0xe6   : > { %v734_v21 = vpop.f32.mrf.mxu0 }
  0xe7   : > { %v358_v26 = vmax.f32 %v352_v22, 0.0 }
  0xe8   : > { %v354_v23 = vpop.f32.mrf.mxu0 }
  0xe9   : > { %v355_v24 = vadd.f32 %v688_v19, %v354_v23 }
  0xea   : > { %v735_v25 = vpop.f32.mrf.mxu0 }
  0xeb   : > { %v359_v27 = vmax.f32 %v355_v24, 0.0 }
  0xed   : > { %v360_v28 = vpack.c.bf16 %v359_v27, %v358_v26 }
  0xef   : > { %753 = vmatmul.mubr.bf16.vlgmr.msra.gmra.mxu1 %v360_v28 }
 0x1af   : > { %v466_v33 = vpop.f32.mrf.mxu1 }
 0x1b0   : > { %v467_v35 = vadd.f32 %v690_v32, %v466_v33 }
 0x1b1   : > { %v754_v34 = vpop.f32.mrf.mxu1 }
 0x1b2   : > { %v473_v39 = vmax.f32 %v467_v35, 0.0 }
 0x1b3   : > { %v469_v36 = vpop.f32.mrf.mxu1 }
 0x1b4   : > { %v470_v37 = vadd.f32 %v690_v32, %v469_v36 }
 0x1b5   : > { %v755_v38 = vpop.f32.mrf.mxu1 }
 0x1b6   : > { %v474_v40 = vmax.f32 %v470_v37, 0.0 }
 0x1b8   : > { %v475_v41 = vpack.c.bf16 %v474_v40, %v473_v39 }
 0x1ba   : > { %773 = vmatmul.mubr.bf16.vlgmr.msra.gmra.mxu0 %v475_v41 }
 0x27a   : > { %v581_v43 = vpop.f32.mrf.mxu0 }
 0x27b   : > { %v582_v44 = vadd.f32 %v699_v42, %v581_v43 }
 0x27c   : > { %v774_v45 = vpop.f32.mrf.mxu0 }
 0x27d   : > { %588 = vmax.xlane.f32.xlu0 %v582_v44 }
 0x27e   : > { %v584_v46 = vpop.f32.mrf.mxu0 }
 0x27f   : > { %v585_v47 = vadd.f32 %v699_v42, %v584_v46 }
 0x280   : > { %v775_v48 = vpop.f32.mrf.mxu0 }
 0x281   : > { %590 = vmax.xlane.f32.xlu0 %v585_v47 }
 0x306   : > { %v589_v49 = vpop.xlane.xlu0 %588 }
 0x307   : > { %v592_v50 = vsub.f32 %v582_v44, %v589_v49 }
 0x309   : > { %v594_v51 = vmul.f32 1.442695, %v592_v50 }
 0x30a   : > { %v591_v52 = vpop.xlane.xlu0 %590 }
 0x30b   : > { %815 = vpow2.f32 %v594_v51  ;;  %v593_v53 = vsub.f32 %v585_v47, %v591_v52 }
 0x30d   : > { %v596_v54 = vmul.f32 1.442695, %v593_v53 }
 0x30f   : > { %817 = vpow2.f32 %v596_v54 }
 0x318   : > { %v816_v55 = vpop.eup %815 }
 0x319   : > { %598 = vadd.xlane.f32.xlu1 %v816_v55 }
 0x31c   : > { %v818_v56 = vpop.eup %817 }
 0x31d   : > { %600 = vadd.xlane.f32.xlu1 %v818_v56 }
 0x3a2   : > { %v599_v57 = vpop.xlane.xlu1 %598 }
 0x3a3   : > { %819 = vrcp.f32 %v599_v57 }
 0x3a6   : > { %v601_v58 = vpop.xlane.xlu1 %600 }
 0x3a7   : > { %821 = vrcp.f32 %v601_v58 }
 0x3b0   : > { %v820_v59 = vpop.eup %819 }
 0x3b1   : > { %v603_v60 = vmul.f32 %v820_v59, %v816_v55 }
 0x3b3   : > { %607 = vst.msk [vmem:[%s295_s23] sm:$0xff] %vm606_vm3, %v603_v60 }
 0x3b4   : > { %v822_v61 = vpop.eup %821 }
 0x3b5   : > { %v605_v62 = vmul.f32 %v822_v61, %v818_v56 }
 0x3b7   : > { %608 = vst.msk [vmem:[%s295_s23 + $0x8] sm:$0xff] %vm606_vm3, %v605_v62 }
 0x3b8 PF: > { %s18_s24 = sadd.s32 1, %s859_s24  }
 0x3b9   : > { %p15_p1 = scmp.ge.s32.totalorder %s18_s24, 4  }
 0x3bb   :  { %17 = sbr.rel (!%p15_p1) target bundleno = 1 (0x1), region = 83 }
 0x3c0   :  { %631 = vsyncpa [#allocation3], 1 }
 0x3c1   :  { %633 = vsyncpa [#allocation3 + $0x1], 1 }

</bundles_post_ra>
